<compile_context>
chip_gen: v7x
topology: tpu7x:2x2x1
jax: 0.10.0
libtpu: 0.0.40
codegen_flags: <defaults>
</compile_context>

<pallas_src>
import functools
import math

import jax
import jax.numpy as jnp
from jax.experimental import pallas as pl
from jax.experimental.pallas import tpu as pltpu


def _round_up(x, m):
    return ((x + m - 1) // m) * m


def _sigmoid(x):
    # Same explicit formula in kernel and reference so they match exactly.
    return 1.0 / (1.0 + jnp.exp(-x))


def _choose_tiling(B, max_block_batch=1024):
    """Pick (block_batch, padded_batch).

    Small B -> exactly two blocks (so dimension_semantics=("parallel",)
    spreads work over both v7x TensorCores); large B -> tiles capped at
    max_block_batch rows to amortize per-grid-step overhead without padding
    far past B."""
    B = max(int(B), 1)
    tb = _round_up(max(-(-B // 2), 1), 8)     # ceil(B/2), sublane-aligned
    tb = min(tb, max_block_batch)
    b_pad = _round_up(B, tb)
    return tb, b_pad


def fuse_decoder_ce_params(params, compute_dtype=jnp.bfloat16):
    """Hoisted (once-per-param-update) parameter fusion.

    Returns:
      wa: (Z, 2Z+S+1) compute_dtype   columns [W1_t0 | W1_t1 | W_rec | W_t]
      ba: (1, 2Z+S+1) f32             matching biases
      wb: (2Z, A)     compute_dtype   rows     [W2_t0 ; W2_t1]
      bb: (2, A)      f32             rows     [b2_t0 ; b2_t1]
    """
    wa = jnp.concatenate(
        [params["w1_0"], params["w1_1"], params["w_rec"], params["w_t"]],
        axis=1).astype(compute_dtype)
    ba = jnp.concatenate(
        [params["b1_0"], params["b1_1"], params["b_rec"], params["b_t"]],
        axis=1).astype(jnp.float32)
    wb = jnp.concatenate([params["w2_0"], params["w2_1"]],
                         axis=0).astype(compute_dtype)
    bb = jnp.concatenate([params["b2_0"], params["b2_1"]],
                         axis=0).astype(jnp.float32)
    return {"wa": wa, "ba": ba, "wb": wb, "bb": bb}


def decoder_ce_kernel(z_ref, t_ref, wa_ref, ba_ref, wb_ref, bb_ref, out_ref, *,
                      z_units, state_size, action_size, out_width):
    Z, S, A = z_units, state_size, action_size

    z = z_ref[...]                                  # (TB, Z)  compute dtype
    t = t_ref[...]                                  # (TB, 1)  f32

    # ---- stage 1: single fused z-consuming matmul -------------------------
    h = jnp.dot(z, wa_ref[...],
                preferred_element_type=jnp.float32) + ba_ref[...]  # (TB, 2Z+S+1)

    hidden = jnp.maximum(h[:, :2 * Z], 0.0)         # lane-aligned (TB, 2Z)
    state = h[:, 2 * Z: 2 * Z + S]                  # reconstruct head
    t_prob = _sigmoid(h[:, 2 * Z + S: 2 * Z + S + 1])

    # ---- stage 2: scaled-hidden dense matmul -> y directly -----------------
    # lanes [0, Z) carry the t0 branch (weight 1-t); lanes [Z, 2Z) carry t1.
    lane = jax.lax.broadcasted_iota(jnp.int32, (1, 2 * Z), 1)
    mix = jnp.where(lane < Z, 1.0 - t, t)           # (TB, 2Z) f32
    hid = (hidden * mix).astype(wb_ref.dtype)       # MXU inputs in compute dtype

    y = jnp.dot(hid, wb_ref[...], preferred_element_type=jnp.float32)
    y = y + (1.0 - t) * bb_ref[0:1, :] + t * bb_ref[1:2, :]          # (TB, A)

    # ---- single full-width unmasked store of the lane-dense slab ----------
    pieces = [y, state, t_prob]
    pad_w = out_width - (A + S + 1)
    if pad_w > 0:
        pieces.append(jnp.zeros((y.shape[0], pad_w), jnp.float32))
    out_ref[...] = jnp.concatenate(pieces, axis=-1)


def decoder_ce_forward(z, t, fused, *, max_block_batch=1024):
    """decoder_ce forward (training path) in one gridded Pallas kernel.

    z: (B, Z) float32, t: (B, 1) float32 (the `_t` treatment indicator).
    fused: output of fuse_decoder_ce_params (built once, not per step).
    Returns (y, state, t_prob)."""
    B, Z = z.shape
    wa, ba, wb, bb = fused["wa"], fused["ba"], fused["wb"], fused["bb"]
    compute_dtype = wa.dtype
    N1 = wa.shape[1]
    A = wb.shape[1]
    S = N1 - 2 * Z - 1
    OUT_W = _round_up(A + S + 1, 128)        # lane-dense combined output width

    TB, B_pad = _choose_tiling(B, max_block_batch)

    zp = z.astype(compute_dtype)
    tp = t.astype(jnp.float32)
    if B_pad != B:
        zp = jnp.pad(zp, ((0, B_pad - B), (0, 0)))
        tp = jnp.pad(tp, ((0, B_pad - B), (0, 0)))

    kernel = functools.partial(decoder_ce_kernel, z_units=Z, state_size=S,
                               action_size=A, out_width=OUT_W)

    cbytes = jnp.dtype(compute_dtype).itemsize
    cost = pl.CostEstimate(
        flops=int(2 * B_pad * Z * N1 + 2 * B_pad * (2 * Z) * A),
        transcendentals=int(B_pad),
        bytes_accessed=int(cbytes * (B_pad * Z + Z * N1 + 2 * Z * A)
                           + 4 * (B_pad + N1 + 2 * A + B_pad * OUT_W)),
    )

    # Explicit VMEM budget: fits v5e's 16 MiB scoped default and v7x's 64 MiB
    # physical VMEM even at the largest tile size.
    work_bytes = (2 * (TB * Z * cbytes + TB * 4 + TB * OUT_W * 4)
                  + 2 * (Z * N1 * cbytes + N1 * 4 + 2 * Z * A * cbytes + 2 * A * 4))
    vmem_limit = int(min(max(4 * work_bytes, 8 << 20), 32 << 20))

    out = pl.pallas_call(
        kernel,
        out_shape=jax.ShapeDtypeStruct((B_pad, OUT_W), jnp.float32),
        grid=(B_pad // TB,),
        in_specs=[
            pl.BlockSpec((TB, Z), lambda i: (i, 0)),        # z block
            pl.BlockSpec((TB, 1), lambda i: (i, 0)),        # _t block
            pl.BlockSpec((Z, N1), lambda i: (0, 0)),        # fused stage-1 W (resident)
            pl.BlockSpec((1, N1), lambda i: (0, 0)),        # fused stage-1 b (resident)
            pl.BlockSpec((2 * Z, A), lambda i: (0, 0)),     # stacked stage-2 W (resident)
            pl.BlockSpec((2, A), lambda i: (0, 0)),         # stage-2 biases (resident)
        ],
        out_specs=pl.BlockSpec((TB, OUT_W), lambda i: (i, 0)),
        compiler_params=pltpu.CompilerParams(
            dimension_semantics=("parallel",),
            vmem_limit_bytes=vmem_limit),
        cost_estimate=cost,
    )(zp, tp, wa, ba, wb, bb)

    # NOTE: downstream consumers should fuse with these slices; if profiling
    # shows materialized slice copies, switch to three separate pallas outputs.
    y = out[:B, :A]
    state = out[:B, A:A + S]
    t_prob = out[:B, A + S:A + S + 1]
    return y, state, t_prob


def init_decoder_ce_params(key, state_size, action_size, z_units):
    """PyTorch-Linear-style init (U[-1/sqrt(fan_in), +1/sqrt(fan_in)]).

    Weights stored as (in_features, out_features); biases as (1, out)."""
    keys = jax.random.split(key, 12)
    Z, S, A = z_units, state_size, action_size

    def uniform(k, shape, fan_in):
        bound = 1.0 / math.sqrt(fan_in)
        return jax.random.uniform(k, shape, jnp.float32, -bound, bound)

    return {
        # reconstruct: Linear(Z, S)
        "w_rec": uniform(keys[0], (Z, S), Z), "b_rec": uniform(keys[1], (1, S), Z),
        # logits_t: Linear(Z, 1) -> Sigmoid
        "w_t":   uniform(keys[2], (Z, 1), Z), "b_t":   uniform(keys[3], (1, 1), Z),
        # py_t0: Linear(Z, Z) -> ReLU -> Linear(Z, A)
        "w1_0":  uniform(keys[4], (Z, Z), Z), "b1_0":  uniform(keys[5], (1, Z), Z),
        "w2_0":  uniform(keys[6], (Z, A), Z), "b2_0":  uniform(keys[7], (1, A), Z),
        # py_t1: Linear(Z, Z) -> ReLU -> Linear(Z, A)
        "w1_1":  uniform(keys[8], (Z, Z), Z), "b1_1":  uniform(keys[9], (1, Z), Z),
        "w2_1":  uniform(keys[10], (Z, A), Z), "b2_1": uniform(keys[11], (1, A), Z),
    }


def decoder_ce_ref(z, t, p):
    """Pure-JAX reference mirroring the PyTorch training-mode forward."""
    state = z @ p["w_rec"] + p["b_rec"]
    t_prob = _sigmoid(z @ p["w_t"] + p["b_t"])
    y0 = jnp.maximum(z @ p["w1_0"] + p["b1_0"], 0.0) @ p["w2_0"] + p["b2_0"]
    y1 = jnp.maximum(z @ p["w1_1"] + p["b1_1"], 0.0) @ p["w2_1"] + p["b2_1"]
    y = t * y1 + (1.0 - t) * y0
    return y, state, t_prob


if __name__ == "__main__":
    # Shapes consistent with the module's constructor defaults.
    # batch=200 exercises a two-block grid (104-row tiles) plus batch padding.
    batch = 200
    state_size = 32
    action_size = 16
    z_units = 64

    key = jax.random.PRNGKey(0)
    k_z, k_t, k_p = jax.random.split(key, 3)

    z = jax.random.normal(k_z, (batch, z_units), dtype=jnp.float32)
    t_in = jax.random.bernoulli(k_t, 0.5, (batch, 1)).astype(jnp.float32)
    params = init_decoder_ce_params(k_p, state_size, action_size, z_units)

    y_ref, state_ref, t_ref = decoder_ce_ref(z, t_in, params)

    # --- f32 path: tight semantic check ------------------------------------
    fused_f32 = fuse_decoder_ce_params(params, compute_dtype=jnp.float32)
    y, state, t_prob = decoder_ce_forward(z, t_in, fused_f32)
    jax.block_until_ready((y, state, t_prob))
    assert y.shape == (batch, action_size)
    assert state.shape == (batch, state_size)
    assert t_prob.shape == (batch, 1)
    assert jnp.allclose(y, y_ref, atol=1e-5, rtol=1e-5)
    assert jnp.allclose(state, state_ref, atol=1e-5, rtol=1e-5)
    assert jnp.allclose(t_prob, t_ref, atol=1e-5, rtol=1e-5)

    # --- bf16 MXU-input path (perf default): loose tolerance ---------------
    fused_bf16 = fuse_decoder_ce_params(params)          # bfloat16 default
    y16, state16, t16 = decoder_ce_forward(z, t_in, fused_bf16)
    jax.block_until_ready((y16, state16, t16))
    assert jnp.allclose(y16, y_ref, atol=3e-2, rtol=3e-2)
    assert jnp.allclose(state16, state_ref, atol=3e-2, rtol=3e-2)
    assert jnp.allclose(t16, t_ref, atol=3e-2, rtol=3e-2)

    print("KERNEL_OK")
</pallas_src>

<mosaic_0001>
module attributes {stable_mosaic.version = 11 : i64} {
  func.func @decoder_ce_kernel(%arg0: i32, %arg1: memref<104x64xf32, #tpu.memory_space<vmem>>, %arg2: memref<104x1xf32, #tpu.memory_space<vmem>>, %arg3: memref<64x161xf32, #tpu.memory_space<vmem>>, %arg4: memref<1x161xf32, #tpu.memory_space<vmem>>, %arg5: memref<128x16xf32, #tpu.memory_space<vmem>>, %arg6: memref<2x16xf32, #tpu.memory_space<vmem>>, %arg7: memref<104x128xf32, #tpu.memory_space<vmem>>) attributes {dimension_semantics = [#tpu.dimension_semantics<parallel>], iteration_bounds = array<i64: 2>, scalar_prefetch = 0 : i64, scratch_operands = 0 : i64, tpu.core_type = #tpu.core_type<tc>, window_params = [{transform_indices = @transform_0, window_bounds = array<i64: 104, 64>}, {transform_indices = @transform_1, window_bounds = array<i64: 104, 1>}, {pipeline_mode = #tpu.pipeline_mode<synchronous>, transform_indices = @transform_2, window_bounds = array<i64: 64, 161>}, {pipeline_mode = #tpu.pipeline_mode<synchronous>, transform_indices = @transform_3, window_bounds = array<i64: 1, 161>}, {pipeline_mode = #tpu.pipeline_mode<synchronous>, transform_indices = @transform_4, window_bounds = array<i64: 128, 16>}, {pipeline_mode = #tpu.pipeline_mode<synchronous>, transform_indices = @transform_5, window_bounds = array<i64: 2, 16>}, {transform_indices = @transform_6, window_bounds = array<i64: 104, 128>}]} {
    %c0 = arith.constant 0 : index
    %c0_0 = arith.constant 0 : index
    %0 = vector.load %arg1[%c0, %c0_0] : memref<104x64xf32, #tpu.memory_space<vmem>>, vector<104x64xf32>
    %c0_1 = arith.constant 0 : index
    %c0_2 = arith.constant 0 : index
    %1 = vector.load %arg2[%c0_1, %c0_2] : memref<104x1xf32, #tpu.memory_space<vmem>>, vector<104x1xf32>
    %c0_3 = arith.constant 0 : index
    %c0_4 = arith.constant 0 : index
    %2 = vector.load %arg3[%c0_3, %c0_4] : memref<64x161xf32, #tpu.memory_space<vmem>>, vector<64x161xf32>
    %cst = arith.constant dense<0.000000e+00> : vector<104x161xf32>
    %3 = tpu.matmul %0, %2, %cst {dimension_numbers = #tpu.dot_dimension_numbers<[1], [0], [0], [1], [0, 0, 1, 1], [], []>} : vector<104x64xf32>, vector<64x161xf32>, vector<104x161xf32> -> vector<104x161xf32>
    %c0_5 = arith.constant 0 : index
    %c0_6 = arith.constant 0 : index
    %4 = vector.load %arg4[%c0_5, %c0_6] : memref<1x161xf32, #tpu.memory_space<vmem>>, vector<1x161xf32>
    %5 = vector.broadcast %4 : vector<1x161xf32> to vector<104x161xf32>
    %6 = arith.addf %3, %5 : vector<104x161xf32>
    %7 = vector.extract_strided_slice %6 {offsets = [0, 0], sizes = [104, 128], strides = [1, 1]} : vector<104x161xf32> to vector<104x128xf32>
    %cst_7 = arith.constant 0.000000e+00 : f32
    %8 = vector.broadcast %cst_7 : f32 to vector<104x128xf32>
    %9 = arith.maximumf %7, %8 : vector<104x128xf32>
    %10 = vector.extract_strided_slice %6 {offsets = [0, 128], sizes = [104, 32], strides = [1, 1]} : vector<104x161xf32> to vector<104x32xf32>
    %11 = vector.extract_strided_slice %6 {offsets = [0, 160], sizes = [104, 1], strides = [1, 1]} : vector<104x161xf32> to vector<104x1xf32>
    %cst_8 = arith.constant 0.000000e+00 : f32
    %12 = vector.broadcast %cst_8 : f32 to vector<104x1xf32>
    %13 = arith.subf %12, %11 : vector<104x1xf32>
    %14 = math.exp %13 : vector<104x1xf32>
    %cst_9 = arith.constant 1.000000e+00 : f32
    %15 = vector.broadcast %cst_9 : f32 to vector<104x1xf32>
    %16 = arith.addf %15, %14 : vector<104x1xf32>
    %cst_10 = arith.constant 1.000000e+00 : f32
    %17 = vector.broadcast %cst_10 : f32 to vector<104x1xf32>
    %18 = arith.divf %17, %16 : vector<104x1xf32>
    %19 = tpu.iota {dimensions = array<i32: 1>} : vector<1x128xi32>
    %c64_i32 = arith.constant 64 : i32
    %20 = vector.broadcast %c64_i32 : i32 to vector<1x128xi32>
    %21 = arith.cmpi slt, %19, %20 : vector<1x128xi32>
    %cst_11 = arith.constant 1.000000e+00 : f32
    %22 = vector.broadcast %cst_11 : f32 to vector<104x1xf32>
    %23 = arith.subf %22, %1 : vector<104x1xf32>
    %24 = vector.shape_cast %21 : vector<1x128xi1> to vector<1x128xi1>
    %25 = vector.broadcast %24 : vector<1x128xi1> to vector<104x128xi1>
    %26 = vector.shape_cast %23 : vector<104x1xf32> to vector<104x1xf32>
    %27 = vector.broadcast %26 : vector<104x1xf32> to vector<104x128xf32>
    %28 = vector.shape_cast %1 : vector<104x1xf32> to vector<104x1xf32>
    %29 = vector.broadcast %28 : vector<104x1xf32> to vector<104x128xf32>
    %30 = arith.select %25, %27, %29 : vector<104x128xi1>, vector<104x128xf32>
    %31 = arith.mulf %9, %30 : vector<104x128xf32>
    %c0_12 = arith.constant 0 : index
    %c0_13 = arith.constant 0 : index
    %32 = vector.load %arg5[%c0_12, %c0_13] : memref<128x16xf32, #tpu.memory_space<vmem>>, vector<128x16xf32>
    %cst_14 = arith.constant dense<0.000000e+00> : vector<104x16xf32>
    %33 = tpu.matmul %31, %32, %cst_14 {dimension_numbers = #tpu.dot_dimension_numbers<[1], [0], [0], [1], [0, 0, 1, 1], [], []>} : vector<104x128xf32>, vector<128x16xf32>, vector<104x16xf32> -> vector<104x16xf32>
    %cst_15 = arith.constant 1.000000e+00 : f32
    %34 = vector.broadcast %cst_15 : f32 to vector<104x1xf32>
    %35 = arith.subf %34, %1 : vector<104x1xf32>
    %c0_16 = arith.constant 0 : index
    %c0_17 = arith.constant 0 : index
    %36 = vector.load %arg6[%c0_16, %c0_17] : memref<2x16xf32, #tpu.memory_space<vmem>>, vector<1x16xf32>
    %37 = vector.broadcast %35 : vector<104x1xf32> to vector<104x16xf32>
    %38 = vector.broadcast %36 : vector<1x16xf32> to vector<104x16xf32>
    %39 = arith.mulf %37, %38 : vector<104x16xf32>
    %40 = arith.addf %33, %39 : vector<104x16xf32>
    %c1 = arith.constant 1 : index
    %c0_18 = arith.constant 0 : index
    %41 = vector.load %arg6[%c1, %c0_18] : memref<2x16xf32, #tpu.memory_space<vmem>>, vector<1x16xf32>
    %42 = vector.broadcast %1 : vector<104x1xf32> to vector<104x16xf32>
    %43 = vector.broadcast %41 : vector<1x16xf32> to vector<104x16xf32>
    %44 = arith.mulf %42, %43 : vector<104x16xf32>
    %45 = arith.addf %40, %44 : vector<104x16xf32>
    %cst_19 = arith.constant 0.000000e+00 : f32
    %46 = vector.broadcast %cst_19 : f32 to vector<104x79xf32>
    %47 = tpu.concatenate %45, %10, %18, %46 in 1 : vector<104x16xf32>, vector<104x32xf32>, vector<104x1xf32>, vector<104x79xf32> -> vector<104x128xf32>
    %c0_20 = arith.constant 0 : index
    %c0_21 = arith.constant 0 : index
    %48 = vector.load %arg7[%c0_20, %c0_21] : memref<104x128xf32, #tpu.memory_space<vmem>>, vector<104x128xf32>
    tpu.vector_store %arg7[%c0_20, %c0_21], %47 {strides = array<i32>} : memref<104x128xf32, #tpu.memory_space<vmem>>, vector<104x128xf32>,
    return
  }
  func.func @transform_0(%arg0: i32) -> (i32, i32) {
    %c0_i32 = arith.constant 0 : i32
    %c0_i32_0 = arith.constant 0 : i32
    return %arg0, %c0_i32 : i32, i32
  }
  func.func @transform_1(%arg0: i32) -> (i32, i32) {
    %c0_i32 = arith.constant 0 : i32
    %c0_i32_0 = arith.constant 0 : i32
    return %arg0, %c0_i32 : i32, i32
  }
  func.func @transform_2(%arg0: i32) -> (i32, i32) {
    %c0_i32 = arith.constant 0 : i32
    %c0_i32_0 = arith.constant 0 : i32
    %c0_i32_1 = arith.constant 0 : i32
    return %c0_i32, %c0_i32_0 : i32, i32
  }
  func.func @transform_3(%arg0: i32) -> (i32, i32) {
    %c0_i32 = arith.constant 0 : i32
    %c0_i32_0 = arith.constant 0 : i32
    %c0_i32_1 = arith.constant 0 : i32
    return %c0_i32, %c0_i32_0 : i32, i32
  }
  func.func @transform_4(%arg0: i32) -> (i32, i32) {
    %c0_i32 = arith.constant 0 : i32
    %c0_i32_0 = arith.constant 0 : i32
    %c0_i32_1 = arith.constant 0 : i32
    return %c0_i32, %c0_i32_0 : i32, i32
  }
  func.func @transform_5(%arg0: i32) -> (i32, i32) {
    %c0_i32 = arith.constant 0 : i32
    %c0_i32_0 = arith.constant 0 : i32
    %c0_i32_1 = arith.constant 0 : i32
    return %c0_i32, %c0_i32_0 : i32, i32
  }
  func.func @transform_6(%arg0: i32) -> (i32, i32) {
    %c0_i32 = arith.constant 0 : i32
    %c0_i32_0 = arith.constant 0 : i32
    return %arg0, %c0_i32 : i32, i32
  }
}

</mosaic_0001>

<bundles_post_ra>
// kernel: tpu_custom_call.1
= control target key start
LH: loop header
LB: loop body
LE: loop exit
PB: predicated region body
PF: predicated region fallthrough
CT: control target
= control target key end

     0   :  { %11 = vsyncpa [#allocation3], 0  ;;  %s2221_s0 = inlined_call_operand.vmem [shape: f32[208,64], index: 0, kind: input, shape index: {}]   ;;  %s2222_s1 = inlined_call_operand.vmem [shape: f32[208,1], index: 1, kind: input, shape index: {}]   ;;  %s2223_s2 = inlined_call_operand.vmem [shape: f32[64,161], index: 2, kind: input, shape index: {}]   ;;  %s2224_s3 = inlined_call_operand.vmem [shape: f32[1,161], index: 3, kind: input, shape index: {}]   ;;  %s2225_s4 = inlined_call_operand.vmem [shape: f32[128,16], index: 4, kind: input, shape index: {}]   ;;  %s2226_s5 = inlined_call_operand.vmem [shape: f32[2,16], index: 5, kind: input, shape index: {}]   ;;  %s2227_s6 = inlined_call_operand.hbm [shape: f32[208,128], index: 6, kind: output, shape index: {}]  }
   0x1   :  { %13 = vsyncpa [#allocation3 + $0x1], 0  ;;  %s1608_s21 = smov 0   ;;  %s1610_s22 = smov 0  }
   0x2   :  { %s1612_s23 = smov 0   ;;  %s1614_s24 = smov 0  }
   0x3 LB: > { %s1629_s25 = sadd.s32 4294967295, %s1563_s24   ;;  %s1219_s26 = sadd.s32 4294967294, %s1563_s24   ;;  %s1563_s24 = sphi %s1614_s24, %s2233_s24   ;;  %s1559_s23 = sphi %s1612_s23, %s2232_s23   ;;  %s1555_s22 = sphi %s1610_s22, %s2231_s22   ;;  %s1551_s21 = sphi %s1608_s21, %s2230_s21  }
   0x4   : > { %s1633_s27 = sadd.s32 1, %s1563_s24   ;;  %s162_s28 = sadd.s32 1, %s1559_s23 }
   0x5   : > { %s159_s29 = ssub.s32 %s1563_s24, %s1633_s27  ;;  %p172_p0 = scmp.ne.s32.totalorder %s1559_s23, %s1555_s22 }
   0x6   : > { %p160_p1 = scmp.eq.s32.totalorder %s159_s29, 0  ;;  %p173_p2 = scmp.eq.s32.totalorder %s1629_s25, 1 }
   0x7   : > { %p178_p3 = scmp.ne.s32.totalorder %s1555_s22, %s1551_s21  ;;  %p179_p4 = scmp.eq.s32.totalorder %s1219_s26, 1 }
   0x8   : > { %s1644_s30 = scalar_select %p160_p1, %s1559_s23, %s162_s28  }
   0x9   : > { %p1646_p5 = por %p173_p2, %p172_p0  ;;  %p1650_p6 = por %p179_p4, %p178_p3 }
   0xa   : > { %p1222_p7 = scmp.ge.s32.totalorder %s1563_s24, 1  ;;  %p227_p8 = scmp.lt.s32.totalorder %s1563_s24, 3 }
   0xc   : > { %p228_p9 = pnand %p1222_p7, %p227_p8 }
   0xd   : > { %v302_v0 = vld [vmem:[%s2223_s2 + $0x8] sm:$0xff] (!%p228_p9)  ;;  %v304_v1 = vld [vmem:[%s2223_s2 + $0x18] sm:$0xff] (!%p228_p9)  ;;  %v301_v2 = vld [vmem:[%s2223_s2] sm:$0xff] (!%p228_p9)  ;;  %s262_s15 = smul.u32 (!%p228_p9), 13, %s1629_s25  ;;  %v1565_v7 = vmov (!%p228_p9), 0.0   ;;  %v1566_v13 = vmov (!%p228_p9), 0  }
   0xe   : > { %231 = sbr.rel (%p228_p9) target bundleno = 532 (0x214), region = 44  ;;  %v1344_v3 = vpack.c.bf16 (!%p228_p9), %v304_v1, %v302_v0  ;;  %v303_v4 = vld [vmem:[%s2223_s2 + $0x10] sm:$0xff] (!%p228_p9)  ;;  %v306_v5 = vld [vmem:[%s2223_s2 + $0x28] sm:$0xff] (!%p228_p9)  ;;  %v308_v6 = vld [vmem:[%s2223_s2 + $0x38] sm:$0xff] (!%p228_p9)  ;;  %433 = vmatprep.mubr.f32.mxu0 (!%p228_p9), %v1565_v7  ;;  %1448 = vset.pattern.permute.xlu1 (!%p228_p9), %v1566_v13  ;;  %vm329_vm0 = vcmask (!%p228_p9), 523264   ;;  %v1567_v43 = vmov (!%p228_p9), 0.0|0.0  }
   0xf   : > { %v1346_v8 = vpack.c.bf16 (!%p228_p9), %v303_v4, %v301_v2  ;;  %v1348_v9 = vpack.c.bf16 (!%p228_p9), %v308_v6, %v306_v5  ;;  %v305_v10 = vld [vmem:[%s2223_s2 + $0x20] sm:$0xff] (!%p228_p9)  ;;  %v307_v11 = vld [vmem:[%s2223_s2 + $0x30] sm:$0xff] (!%p228_p9)  ;;  %v310_v12 = vld [vmem:[%s2223_s2 + $0x48] sm:$0xff] (!%p228_p9)  ;;  %p263_p10 = scmp.lt.s32.totalorder (!%p228_p9), %s262_s15, 25  ;;  %1447 = vset.pattern.permute.xlu0 (!%p228_p9), %v1566_v13  ;;  %1384 = vmatprep.subr.bf16.mxu1 (!%p228_p9), %v1567_v43  ;;  %vm1568_vm1 = vmmov (!%p228_p9), 0   ;;  %s1569_s11 = smov (!%p228_p9), 16  }
  0x10   : > { %1345 = vmatprep.subr.bf16.mxu0 (!%p228_p9), %v1344_v3  ;;  %v312_v14 = vld [vmem:[%s2223_s2 + $0x58] sm:$0xff] (!%p228_p9)  ;;  %v1350_v15 = vpack.c.bf16 (!%p228_p9), %v307_v11, %v305_v10  ;;  %v309_v17 = vld [vmem:[%s2223_s2 + $0x40] sm:$0xff] (!%p228_p9)  ;;  %v311_v18 = vld [vmem:[%s2223_s2 + $0x50] sm:$0xff] (!%p228_p9)  ;;  %1311 = vmatprep.mubr.msk.f32.mxu1 (!%p228_p9), %vm1568_vm1, %v1565_v7  ;;  %s259_s17 = sand.u32 (!%p228_p9), 1, %s1555_s22   ;;  %vm1076_vm3 = vcmask (!%p228_p9), 130048   ;;  %vm1090_vm4 = vcmask (!%p228_p9), 392192  }
  0x11   : > { %1347 = vmatpush1.bf16.msra.mxu0 (!%p228_p9), %v1346_v8  ;;  %v1352_v16 = vpack.c.bf16 (!%p228_p9), %v312_v14, %v310_v12  ;;  %v314_v19 = vld [vmem:[%s2223_s2 + $0x68] sm:$0xff] (!%p228_p9)  ;;  %v316_v20 = vld [vmem:[%s2223_s2 + $0x78] sm:$0xff] (!%p228_p9)  ;;  %v1354_v21 = vpack.c.bf16 (!%p228_p9), %v311_v18, %v309_v17  ;;  %v313_v23 = vld [vmem:[%s2223_s2 + $0x60] sm:$0xff] (!%p228_p9)  ;;  %vm1104_vm5 = vcmask (!%p228_p9), 400384   ;;  %s1243_s20 = smul.u32 (!%p228_p9), 1664, %s1629_s25  ;;  %s2180_s25 = scalar_lea.sflag (!%p228_p9), [#allocation3], %s259_s17 }
  0x12   : > { %1349 = vmatprep.subr.bf16.mxu0 (!%p228_p9), %v1348_v9  ;;  %v1356_v22 = vpack.c.bf16 (!%p228_p9), %v316_v20, %v314_v19  ;;  %v315_v24 = vld [vmem:[%s2223_s2 + $0x70] sm:$0xff] (!%p228_p9)  ;;  %v777_v46 = vld [vmem:[%s2225_s4] sm:$0xff] (!%p228_p9)  ;;  %v778_v47 = vld [vmem:[%s2225_s4 + $0x8] sm:$0xff] (!%p228_p9)  ;;  %s1570_s10 = smov (!%p228_p9), [#allocation2]  }
  0x13   : > { %v1358_v27 = vpack.c.bf16 (!%p228_p9), %v315_v24, %v313_v23  ;;  %v1361_v49 = vpack.c.bf16 (!%p228_p9), %v778_v47, %v777_v46  ;;  %v779_v52 = vld [vmem:[%s2225_s4 + $0x10] sm:$0xff] (!%p228_p9)  ;;  %v780_v53 = vld [vmem:[%s2225_s4 + $0x18] sm:$0xff] (!%p228_p9)  ;;  %v781_v59 = vld [vmem:[%s2225_s4 + $0x20] sm:$0xff] (!%p228_p9)  ;;  %s2171_s29 = scalar_lea.hbm (!%p228_p9), %s2227_s6, %s1243_s20 }
  0x14   : > { %v1364_v55 = vpack.c.bf16 (!%p228_p9), %v780_v53, %v779_v52  ;;  %v782_v60 = vld [vmem:[%s2225_s4 + $0x28] sm:$0xff] (!%p228_p9)  ;;  %v783_v2 = vld [vmem:[%s2225_s4 + $0x30] sm:$0xff] (!%p228_p9)  ;;  %v784_v3 = vld [vmem:[%s2225_s4 + $0x38] sm:$0xff] (!%p228_p9) }
  0x15   : > { %s2235_s15 = smov (!%p263_p10, %s262_s15), 25  ;;  %1351 = vmatpush1.bf16.msra.mxu0 %v1350_v15  ;;  %1392 = vmatpush3.bf16.msra.mxu1 %v1361_v49  ;;  %v1367_v62 = vpack.c.bf16 %v782_v60, %v781_v59  ;;  %v1370_v4 = vpack.c.bf16 %v784_v3, %v783_v2  ;;  %v785_v8 = vld [vmem:[%s2225_s4 + $0x40] sm:$0xff]  ;;  %v786_v9 = vld [vmem:[%s2225_s4 + $0x48] sm:$0xff]  ;;  %v787_v15 = vld [vmem:[%s2225_s4 + $0x50] sm:$0xff] }
  0x16   : > { %s1223_s9 = sshll.u32 %s2235_s15, 3  ;;  %1353 = vmatprep.subr.bf16.mxu0 %v1352_v16  ;;  %1385 = vmatprep.subr.bf16.mxu1 %v1567_v43  ;;  %v1373_v11 = vpack.c.bf16 %v786_v9, %v785_v8  ;;  %v788_v16 = vld [vmem:[%s2225_s4 + $0x58] sm:$0xff]  ;;  %v791_v24 = vld [vmem:[%s2225_s4 + $0x70] sm:$0xff]  ;;  %s1400_s15 = smul.u32 104, %s259_s17 }
  0x17   : > { %s1703_s12 = scalar_lea.vmem %s2222_s1, %s1223_s9  ;;  %s1716_s19 = scalar_lea.vmem %s2221_s0, %s1223_s9  ;;  %v1376_v17 = vpack.c.bf16 %v788_v16, %v787_v15 }
  0x18   : > { %v291_v25 = vld [vmem:[%s1703_s12 + $0x18] sm:$0xff]  ;;  %v290_v26 = vld [vmem:[%s1703_s12 + $0x10] sm:$0xff]  ;;  %v292_v29 = vld [vmem:[%s1703_s12 + $0x20] sm:$0xff]  ;;  %s2063_s18 = scalar_lea.vmem [#allocation2], %s1400_s15 }
  0x19   : > { %1355 = vmatpush1.bf16.msra.mxu0 %v1354_v21  ;;  %703 = vperm.xlu1 %1448, %v291_v25   ;;  %v608_v28 = vsub.f32 1.0, %v290_v26  ;;  %v275_v30 = vld [vmem:[%s1716_s19] sm:$0xff]  ;;  %v609_v31 = vsub.f32 1.0, %v291_v25  ;;  %v610_v32 = vsub.f32 1.0, %v292_v29  ;;  %v293_v33 = vld [vmem:[%s1703_s12 + $0x28] sm:$0xff]  ;;  %v294_v36 = vld [vmem:[%s1703_s12 + $0x30] sm:$0xff] }
  0x1a   : > { %1357 = vmatprep.subr.bf16.mxu0 %v1356_v22  ;;  %698 = vperm.xlu0 %1447, %v290_v26   ;;  %v276_v34 = vld [vmem:[%s1716_s19 + $0x8] sm:$0xff]  ;;  %v611_v35 = vsub.f32 1.0, %v293_v33  ;;  %v277_v37 = vld [vmem:[%s1716_s19 + $0x10] sm:$0xff]  ;;  %v612_v38 = vsub.f32 1.0, %v294_v36  ;;  %v295_v39 = vld [vmem:[%s1703_s12 + $0x38] sm:$0xff]  ;;  %s1145_s26 = sshll.u32 %s2063_s18, 4  ;;  %s2173_s26 = int_to_ptr.vmem [resolvable:$true] %s1145_s26 }
  0x1b   : > { %v278_v40 = vld [vmem:[%s1716_s19 + $0x18] sm:$0xff]  ;;  %v613_v41 = vsub.f32 1.0, %v295_v39  ;;  %v296_v42 = vld [vmem:[%s1703_s12 + $0x40] sm:$0xff]  ;;  %v297_v48 = vld [vmem:[%s1703_s12 + $0x48] sm:$0xff]  ;;  %1393 = vmatpush3.bf16.msra.mxu1 %v1364_v55  ;;  %s1501_s9 = scalar_lea.vmem %s2173_s26, 1664 }
  0x1c   : > { %v279_v44 = vld [vmem:[%s1716_s19 + $0x20] sm:$0xff]  ;;  %v614_v45 = vsub.f32 1.0, %v296_v42  ;;  %v280_v50 = vld [vmem:[%s1716_s19 + $0x28] sm:$0xff]  ;;  %v615_v51 = vsub.f32 1.0, %v297_v48  ;;  %v298_v54 = vld [vmem:[%s1703_s12 + $0x50] sm:$0xff]  ;;  %1386 = vmatprep.subr.bf16.mxu1 %v1567_v43  ;;  %p1502_p11 = scmp.ne.s32.totalorder %s2173_s26, %s1501_s9 }
  0x1d   : > { %1359 = vmatpush1.bf16.msra.mxu0 %v1358_v27  ;;  %708 = vperm.xlu1 %1448, %v292_v29   ;;  %v281_v56 = vld [vmem:[%s1716_s19 + $0x30] sm:$0xff]  ;;  %v616_v57 = vsub.f32 1.0, %v298_v54  ;;  %v299_v58 = vld [vmem:[%s1703_s12 + $0x58] sm:$0xff]  ;;  %v288_v61 = vld [vmem:[%s1703_s12] sm:$0xff] }
  0x1e   : > { %633 = vperm.xlu0 %1447, %v608_v28   ;;  %1360 = vmatprep.subr.bf16.mxu0 %v1567_v43  ;;  %v282_v63 = vld [vmem:[%s1716_s19 + $0x38] sm:$0xff]  ;;  %v617_v0 = vsub.f32 1.0, %v299_v58  ;;  %v606_v1 = vsub.f32 1.0, %v288_v61  ;;  %v283_v5 = vld [vmem:[%s1716_s19 + $0x40] sm:$0xff]  ;;  %v289_v10 = vld [vmem:[%s1703_s12 + $0x8] sm:$0xff]  ;;  %p1503_p12 = pnand %p1502_p11, %p1646_p5 }
  0x1f   : > { %1394 = vmatpush3.bf16.msra.mxu1 %v1367_v62  ;;  %v300_v6 = vld [vmem:[%s1703_s12 + $0x60] sm:$0xff]  ;;  %v284_v12 = vld [vmem:[%s1716_s19 + $0x48] sm:$0xff]  ;;  %v607_v14 = vsub.f32 1.0, %v289_v10  ;;  %v285_v18 = vld [vmem:[%s1716_s19 + $0x50] sm:$0xff] }
  0x20   : > { %1225 = vmatmul.mubr.msk.f32.vlgmr.msra.gmra.mrb[0].mxu0 %vm329_vm0, %v275_v30  ;;  %1387 = vmatprep.subr.bf16.mxu1 %v1567_v43  ;;  %v618_v13 = vsub.f32 1.0, %v300_v6  ;;  %v286_v19 = vld [vmem:[%s1716_s19 + $0x58] sm:$0xff]  ;;  %v287_v20 = vld [vmem:[%s1716_s19 + $0x60] sm:$0xff]  ;;  %v790_v22 = vld [vmem:[%s2225_s4 + $0x68] sm:$0xff]  ;;  %p1504_p13 = pneg %p1503_p12 }
  0x21   : > { %439 = vmatprep.mubr.f32.mxu0 %v1565_v7  ;;  %638 = vperm.xlu1 %1448, %v609_v31   ;;  %v789_v21 = vld [vmem:[%s2225_s4 + $0x60] sm:$0xff]  ;;  %v792_v25 = vld [vmem:[%s2225_s4 + $0x78] sm:$0xff] }
  0x22   : > { %643 = vperm.xlu0 %1447, %v610_v32   ;;  %1362 = vmatpush3.bf16.msra.mxu0 %v1361_v49  ;;  %v1379_v23 = vpack.c.bf16 %v790_v22, %v789_v21  ;;  %v1382_v26 = vpack.c.bf16 %v792_v25, %v791_v24 }
  0x23   : > { %1363 = vmatprep.subr.bf16.mxu0 %v1567_v43  ;;  %1395 = vmatpush3.bf16.msra.mxu1 %v1370_v4 }
  0x24   : > { %1226 = vmatmul.mubr.msk.f32.gmra.mrb[2].mxu0 %vm329_vm0, %v276_v34  ;;  %1388 = vmatprep.subr.bf16.mxu1 %v1567_v43 }
  0x25   : > { %445 = vmatprep.mubr.f32.mxu0 %v1565_v7  ;;  %713 = vperm.xlu1 %1448, %v293_v33  }
  0x26   : > { %648 = vperm.xlu0 %1447, %v611_v35   ;;  %1365 = vmatpush3.bf16.msra.mxu0 %v1364_v55 }
  0x27   : > { %1366 = vmatprep.subr.bf16.mxu0 %v1567_v43  ;;  %1396 = vmatpush3.bf16.msra.mxu1 %v1373_v11 }
  0x28   : > { %1227 = vmatmul.mubr.msk.f32.gmra.mrb[4].mxu0 %vm329_vm0, %v277_v37  ;;  %1389 = vmatprep.subr.bf16.mxu1 %v1567_v43 }
  0x29   : > { %451 = vmatprep.mubr.f32.mxu0 %v1565_v7  ;;  %718 = vperm.xlu1 %1448, %v294_v36  }
  0x2a   : > { %653 = vperm.xlu0 %1447, %v612_v38   ;;  %1368 = vmatpush3.bf16.msra.mxu0 %v1367_v62  ;;  %v319_v38 = vlaneseq }
  0x2b   : > { %1369 = vmatprep.subr.bf16.mxu0 %v1567_v43  ;;  %1397 = vmatpush3.bf16.msra.mxu1 %v1376_v17 }
  0x2c   : > { %1228 = vmatmul.mubr.msk.f32.gmra.mrb[6].mxu0 %vm329_vm0, %v278_v40  ;;  %1390 = vmatprep.subr.bf16.mxu1 %v1567_v43  ;;  %v320_v40 = vshrl.u32 %v319_v38, 7  ;;  %v1866_v46 = vand.u32 127, %v319_v38 }
  0x2d   : > { %457 = vmatprep.mubr.f32.mxu0 %v1565_v7  ;;  %723 = vperm.xlu1 %1448, %v295_v39  }
  0x2e   : > { %658 = vperm.xlu0 %1447, %v613_v41   ;;  %1371 = vmatpush3.bf16.msra.mxu0 %v1370_v4  ;;  %vm605_vm2 = vcmp.lt.s32.totalorder %v1866_v46, 64 }
  0x2f   : > { %1372 = vmatprep.subr.bf16.mxu0 %v1567_v43  ;;  %1398 = vmatpush3.bf16.msra.mxu1 %v1379_v23 }
  0x30   : > { %1229 = vmatmul.mubr.msk.f32.gmra.mrb[8].mxu0 %vm329_vm0, %v279_v44  ;;  %1391 = vmatprep.subr.bf16.mxu1 %v1567_v43  ;;  %v317_v44 = vld [vmem:[%s2224_s3] sm:$0x3] }
  0x31   : > { %463 = vmatprep.mubr.f32.mxu0 %v1565_v7  ;;  %728 = vperm.xlu1 %1448, %v296_v42   ;;  %v321_v42 = vsub.s32 0, %v320_v40 }
  0x32   : > { %663 = vperm.xlu0 %1447, %v614_v45   ;;  %1374 = vmatpush3.bf16.msra.mxu0 %v1373_v11  ;;  %v325_v45 = vsub.s32 1, %v320_v40 }
  0x33   : > { %1375 = vmatprep.subr.bf16.mxu0 %v1567_v43  ;;  %1399 = vmatpush3.bf16.msra.mxu1 %v1382_v26 }
  0x34   : > { %1230 = vmatmul.mubr.msk.f32.gmra.mrb[10].mxu0 %vm329_vm0, %v280_v50  ;;  %v1872_v49 = vrot.slane %v317_v44, %v325_v45 }
  0x35   : > { %469 = vmatprep.mubr.f32.mxu0 %v1565_v7  ;;  %733 = vperm.xlu1 %1448, %v297_v48   ;;  %v1870_v48 = vrot.slane %v317_v44, %v321_v42 }
  0x36   : > { %668 = vperm.xlu0 %1447, %v615_v51   ;;  %1377 = vmatpush3.bf16.msra.mxu0 %v1376_v17 }
  0x37   : > { %1378 = vmatprep.subr.bf16.mxu0 %v1567_v43 }
  0x38   : > { %1231 = vmatmul.mubr.msk.f32.gmra.mrb[12].mxu0 %vm329_vm0, %v281_v56 }
  0x39   : > { %475 = vmatprep.mubr.f32.mxu0 %v1565_v7  ;;  %738 = vperm.xlu1 %1448, %v298_v54  }
  0x3a   : > { %673 = vperm.xlu0 %1447, %v616_v57   ;;  %1380 = vmatpush3.bf16.msra.mxu0 %v1379_v23 }
  0x3b   : > { %1381 = vmatprep.subr.bf16.mxu0 %v1567_v43 }
  0x3c   : > { %1232 = vmatmul.mubr.msk.f32.gmra.mrb[14].mxu0 %vm329_vm0, %v282_v63 }
  0x3d   : > { %481 = vmatprep.mubr.f32.mxu0 %v1565_v7  ;;  %678 = vperm.xlu1 %1448, %v617_v0  }
  0x3e   : > { %623 = vperm.xlu0 %1447, %v606_v1   ;;  %1383 = vmatpush3.bf16.msra.mxu0 %v1382_v26 }
  0x40   : > { %1233 = vmatmul.mubr.msk.f32.gmra.mrb[16].mxu0 %vm329_vm0, %v283_v5 }
  0x41   : > { %487 = vmatprep.mubr.f32.mxu0 %v1565_v7  ;;  %743 = vperm.xlu1 %1448, %v299_v58  }
  0x42   : > { %688 = vperm.xlu0 %1447, %v288_v61  }
  0x44   : > { %1234 = vmatmul.mubr.msk.f32.gmra.mrb[18].mxu0 %vm329_vm0, %v284_v12 }
  0x45   : > { %493 = vmatprep.mubr.f32.mxu0 %v1565_v7  ;;  %683 = vperm.xlu1 %1448, %v618_v13  }
  0x46   : > { %628 = vperm.xlu0 %1447, %v607_v14  }
  0x48   : > { %1235 = vmatmul.mubr.msk.f32.gmra.mrb[20].mxu0 %vm329_vm0, %v285_v18 }
  0x49   : > { %499 = vmatprep.mubr.f32.mxu0 %v1565_v7  ;;  %748 = vperm.xlu1 %1448, %v300_v6  }
  0x4a   : > { %693 = vperm.xlu0 %1447, %v289_v10  }
  0x4c   : > { %1236 = vmatmul.mubr.msk.f32.gmra.mrb[22].mxu0 %vm329_vm0, %v286_v19 }
  0x4d   : > { %505 = vmatprep.mubr.f32.mxu0 %v1565_v7 }
  0x50   : > { %1237 = vmatmul.mubr.msk.f32.gmra.mrb[24].mxu0 %vm329_vm0, %v287_v20 }
  0x51   : > { %1305 = vmatprep.mubr.msk.f32.mxu0 %vm1568_vm1, %v1565_v7 }
  0x98   : > { %v1851_v35 = vpop.permute.xlu1 %703 }
  0x99   : > { %v1835_v27 = vpop.permute.xlu0 %698 }
  0x9c   : > { %v1855_v37 = vpop.permute.xlu1 %708 }
  0x9d   : > { %v1837_v28 = vpop.permute.xlu0 %633 }
  0x9e   : > { %v753_v14 = vsel %vm605_vm2, %v1837_v28, %v1835_v27 }
  0xa0   : > { %v1859_v41 = vpop.permute.xlu1 %638 }
  0xa1   : > { %v1839_v29 = vpop.permute.xlu0 %643  ;;  %v754_v24 = vsel %vm605_vm2, %v1859_v41, %v1851_v35 }
  0xa4   : > { %v1868_v47 = vpop.permute.xlu1 %713 }
  0xa5   : > { %v1841_v30 = vpop.permute.xlu0 %648 }
  0xa8   : > { %v1877_v52 = vpop.permute.xlu1 %718 }
  0xa9   : > { %v1843_v31 = vpop.permute.xlu0 %653 }
  0xac   : > { %v1890_v2 = vpop.permute.xlu1 %723 }
  0xad   : > { %v1845_v32 = vpop.permute.xlu0 %658 }
  0xb0   : > { %v1906_v17 = vpop.permute.xlu1 %728 }
  0xb1   : > { %v1847_v33 = vpop.permute.xlu0 %663 }
  0xb5   : > { %v1849_v34 = vpop.permute.xlu0 %668 }
  0xb9   : > { %v1853_v36 = vpop.permute.xlu0 %673 }
  0xbd   : > { %v1857_v39 = vpop.permute.xlu0 %623 }
  0xc1   : > { %v1861_v43 = vpop.permute.xlu0 %688 }
  0xc2   : > { %v751_v55 = vsel %vm605_vm2, %v1857_v39, %v1861_v43 }
  0xc5   : > { %v1875_v50 = vpop.permute.xlu0 %628 }
  0xc9   : > { %v1886_v61 = vpop.permute.xlu0 %693 }
  0xca   : > { %v752_v4 = vsel %vm605_vm2, %v1875_v50, %v1886_v61 }
  0xf3   : > { %v435_v51 = vpop.f32.mrb[0].mxu0 }
  0xf4   : > { %v436_v53 = vadd.f32 %v435_v51, %v1870_v48  ;;  %v437_v54 = vpop.f32.mrb[1].mxu0 }
  0xf5   : > { %v438_v56 = vadd.f32 %v437_v54, %v1872_v49 }
  0xf6   : > { %v512_v57 = vmax.f32 %v436_v53, 0.0  ;;  %v1919_v53 = vpop.permute.xlu1 %733 }
  0xf7   : > { %v525_v58 = vsub.f32 0.0, %v438_v56  ;;  %v441_v59 = vpop.f32.mrb[2].mxu0  ;;  %985 = vrot.lane.b32.xlu0 %v438_v56, %s1569_s11 }
  0xf8   : > { %v764_v60 = vmul.f32 %v751_v55, %v512_v57  ;;  %v442_v62 = vadd.f32 %v441_v59, %v1870_v48  ;;  %v443_v63 = vpop.f32.mrb[3].mxu0  ;;  %v755_v55 = vsel %vm605_vm2, %v1839_v29, %v1855_v37 }
  0xf9   : > { %v538_v0 = vmul.f32 1.442695, %v525_v58  ;;  %v444_v1 = vadd.f32 %v443_v63, %v1872_v49 }
  0xfa   : > { %v513_v3 = vmax.f32 %v442_v62, 0.0  ;;  %1306 = vmatmul.mubr.f32.vlgmr.msra.gmra.mrb[26].mxu0 %v764_v60 }
  0xfb   : > { %1449 = vpow2.f32 %v538_v0  ;;  %v526_v5 = vsub.f32 0.0, %v444_v1  ;;  %v447_v6 = vpop.f32.mrb[4].mxu0  ;;  %987 = vrot.lane.b32.xlu1 %v444_v1, %s1569_s11  ;;  %1308 = vmatprep.mubr.msk.f32.mxu0 %vm1568_vm1, %v1565_v7 }
  0xfc   : > { %v765_v8 = vmul.f32 %v752_v4, %v513_v3  ;;  %v448_v9 = vadd.f32 %v447_v6, %v1870_v48  ;;  %v449_v10 = vpop.f32.mrb[5].mxu0  ;;  %v756_v4 = vsel %vm605_vm2, %v1841_v30, %v1868_v47 }
  0xfd   : > { %v540_v11 = vmul.f32 1.442695, %v526_v5  ;;  %v450_v12 = vadd.f32 %v449_v10, %v1872_v49 }
  0xfe   : > { %v514_v13 = vmax.f32 %v448_v9, 0.0  ;;  %1309 = vmatmul.mubr.f32.gmra.mrb[28].mxu0 %v765_v8  ;;  %v1937_v8 = vpop.permute.xlu1 %738 }
  0xff   : > { %1451 = vpow2.f32 %v540_v11  ;;  %v527_v15 = vsub.f32 0.0, %v450_v12  ;;  %v453_v16 = vpop.f32.mrb[6].mxu0  ;;  %989 = vrot.lane.b32.xlu0 %v450_v12, %s1569_s11 }
 0x100   : > { %v766_v18 = vmul.f32 %v753_v14, %v514_v13  ;;  %v454_v19 = vadd.f32 %v453_v16, %v1870_v48  ;;  %v455_v20 = vpop.f32.mrb[7].mxu0 }
 0x101   : > { %v542_v21 = vmul.f32 1.442695, %v527_v15  ;;  %v456_v22 = vadd.f32 %v455_v20, %v1872_v49 }
 0x102   : > { %v515_v23 = vmax.f32 %v454_v19, 0.0  ;;  %1312 = vmatmul.mubr.f32.vlgmr.msra.gmra.mrb[0].mxu1 %v766_v18  ;;  %v757_v18 = vsel %vm605_vm2, %v1843_v31, %v1877_v52 }
 0x103   : > { %1453 = vpow2.f32 %v542_v21  ;;  %v528_v25 = vsub.f32 0.0, %v456_v22  ;;  %v459_v26 = vpop.f32.mrb[8].mxu0  ;;  %991 = vrot.lane.b32.xlu1 %v456_v22, %s1569_s11  ;;  %1314 = vmatprep.mubr.msk.f32.mxu1 %vm1568_vm1, %v1565_v7 }
 0x104   : > { %v767_v38 = vmul.f32 %v754_v24, %v515_v23  ;;  %v460_v40 = vadd.f32 %v459_v26, %v1870_v48  ;;  %v461_v42 = vpop.f32.mrb[9].mxu0 }
 0x105   : > { %v1450_v44 = vpop.eup %1449  ;;  %v544_v45 = vmul.f32 1.442695, %v528_v25  ;;  %v462_v51 = vadd.f32 %v461_v42, %v1872_v49 }
 0x106   : > { %v516_v54 = vmax.f32 %v460_v40, 0.0  ;;  %1315 = vmatmul.mubr.f32.gmra.mrb[2].mxu1 %v767_v38  ;;  %v564_v58 = vadd.f32 1.0, %v1450_v44  ;;  %v1950_v40 = vpop.permute.xlu1 %678  ;;  %v758_v44 = vsel %vm605_vm2, %v1845_v32, %v1890_v2 }
 0x107   : > { %1455 = vpow2.f32 %v544_v45  ;;  %v529_v56 = vsub.f32 0.0, %v462_v51  ;;  %v465_v57 = vpop.f32.mrb[10].mxu0  ;;  %993 = vrot.lane.b32.xlu0 %v462_v51, %s1569_s11  ;;  %1317 = vmatprep.mubr.msk.f32.mxu1 %vm1568_vm1, %v1565_v7 }
 0x108   : > { %v768_v59 = vmul.f32 %v755_v55, %v516_v54  ;;  %v466_v60 = vadd.f32 %v465_v57, %v1870_v48  ;;  %v467_v62 = vpop.f32.mrb[11].mxu0 }
 0x109   : > { %v1452_v63 = vpop.eup %1451  ;;  %v546_v0 = vmul.f32 1.442695, %v529_v56  ;;  %v468_v1 = vadd.f32 %v467_v62, %v1872_v49 }
 0x10a   : > { %v517_v3 = vmax.f32 %v466_v60, 0.0  ;;  %1318 = vmatmul.mubr.f32.gmra.mrb[4].mxu1 %v768_v59  ;;  %v565_v9 = vadd.f32 1.0, %v1452_v63 }
 0x10b   : > { %1457 = vpow2.f32 %v546_v0  ;;  %v530_v5 = vsub.f32 0.0, %v468_v1  ;;  %v471_v6 = vpop.f32.mrb[12].mxu0  ;;  %995 = vrot.lane.b32.xlu1 %v468_v1, %s1569_s11  ;;  %1320 = vmatprep.mubr.msk.f32.mxu1 %vm1568_vm1, %v1565_v7  ;;  %v759_v0 = vsel %vm605_vm2, %v1847_v33, %v1906_v17 }
 0x10c   : > { %1459 = vrcp.f32 %v564_v58  ;;  %v769_v10 = vmul.f32 %v756_v4, %v517_v3  ;;  %v472_v11 = vadd.f32 %v471_v6, %v1870_v48  ;;  %v473_v12 = vpop.f32.mrb[13].mxu0  ;;  %v1967_v4 = vpop.permute.xlu1 %743 }
 0x10d   : > { %v1454_v13 = vpop.eup %1453  ;;  %v548_v14 = vmul.f32 1.442695, %v530_v5  ;;  %v474_v15 = vadd.f32 %v473_v12, %v1872_v49 }
 0x10e   : > { %v518_v16 = vmax.f32 %v472_v11, 0.0  ;;  %1321 = vmatmul.mubr.f32.gmra.mrb[6].mxu1 %v769_v10  ;;  %v566_v21 = vadd.f32 1.0, %v1454_v13 }
 0x10f   : > { %1461 = vpow2.f32 %v548_v14  ;;  %v531_v19 = vsub.f32 0.0, %v474_v15  ;;  %v477_v20 = vpop.f32.mrb[14].mxu0  ;;  %997 = vrot.lane.b32.xlu0 %v474_v15, %s1569_s11  ;;  %1323 = vmatprep.mubr.msk.f32.mxu1 %vm1568_vm1, %v1565_v7 }
 0x110   : > { %1463 = vrcp.f32 %v565_v9  ;;  %v770_v22 = vmul.f32 %v757_v18, %v518_v16  ;;  %v478_v23 = vadd.f32 %v477_v20, %v1870_v48  ;;  %v479_v24 = vpop.f32.mrb[15].mxu0  ;;  %v760_v18 = vsel %vm605_vm2, %v1849_v34, %v1919_v53 }
 0x111   : > { %v1456_v25 = vpop.eup %1455  ;;  %v550_v26 = vmul.f32 1.442695, %v531_v19  ;;  %v480_v38 = vadd.f32 %v479_v24, %v1872_v49 }
 0x112   : > { %v519_v42 = vmax.f32 %v478_v23, 0.0  ;;  %1324 = vmatmul.mubr.f32.gmra.mrb[8].mxu1 %v770_v22  ;;  %v567_v54 = vadd.f32 1.0, %v1456_v25 }
 0x113   : > { %1465 = vpow2.f32 %v550_v26  ;;  %v532_v45 = vsub.f32 0.0, %v480_v38  ;;  %v483_v51 = vpop.f32.mrb[16].mxu0  ;;  %999 = vrot.lane.b32.xlu1 %v480_v38, %s1569_s11  ;;  %1326 = vmatprep.mubr.msk.f32.mxu1 %vm1568_vm1, %v1565_v7 }
 0x114   : > { %1467 = vrcp.f32 %v566_v21  ;;  %v771_v55 = vmul.f32 %v758_v44, %v519_v42  ;;  %v484_v56 = vadd.f32 %v483_v51, %v1870_v48  ;;  %v485_v57 = vpop.f32.mrb[17].mxu0  ;;  %v1983_v42 = vpop.permute.xlu1 %683  ;;  %v761_v51 = vsel %vm605_vm2, %v1853_v36, %v1937_v8 }
 0x115   : > { %v1458_v58 = vpop.eup %1457  ;;  %v552_v59 = vmul.f32 1.442695, %v532_v45  ;;  %v486_v60 = vadd.f32 %v485_v57, %v1872_v49 }
 0x116   : > { %v1460_v62 = vpop.eup %1459  ;;  %v520_v63 = vmax.f32 %v484_v56, 0.0  ;;  %1327 = vmatmul.mubr.f32.gmra.mrb[10].mxu1 %v771_v55  ;;  %v568_v5 = vadd.f32 1.0, %v1458_v58 }
 0x117   : > { %1469 = vpow2.f32 %v552_v59  ;;  %v533_v1 = vsub.f32 0.0, %v486_v60  ;;  %v489_v3 = vpop.f32.mrb[18].mxu0  ;;  %1001 = vrot.lane.b32.xlu0 %v486_v60, %s1569_s11  ;;  %1037 = vrot.lane.b32.xlu1 %v1460_v62, %s1569_s11 }
 0x118   : > { %1471 = vrcp.f32 %v567_v54  ;;  %v772_v6 = vmul.f32 %v759_v0, %v520_v63  ;;  %v490_v9 = vadd.f32 %v489_v3, %v1870_v48  ;;  %v491_v10 = vpop.f32.mrb[19].mxu0  ;;  %1329 = vmatprep.mubr.msk.f32.mxu1 %vm1568_vm1, %v1565_v7  ;;  %v762_v3 = vsel %vm605_vm2, %v1950_v40, %v1967_v4 }
 0x119   : > { %v1462_v11 = vpop.eup %1461  ;;  %v554_v12 = vmul.f32 1.442695, %v533_v1  ;;  %v492_v13 = vadd.f32 %v491_v10, %v1872_v49 }
 0x11a   : > { %v1464_v14 = vpop.eup %1463  ;;  %v569_v15 = vadd.f32 1.0, %v1462_v11  ;;  %v521_v16 = vmax.f32 %v490_v9, 0.0  ;;  %1330 = vmatmul.mubr.f32.gmra.mrb[12].mxu1 %v772_v6  ;;  %v2001_v9 = vpop.permute.xlu1 %748 }
 0x11b   : > { %1473 = vpow2.f32 %v554_v12  ;;  %v534_v19 = vsub.f32 0.0, %v492_v13  ;;  %v495_v20 = vpop.f32.mrb[20].mxu0  ;;  %1039 = vrot.lane.b32.xlu0 %v1464_v14, %s1569_s11  ;;  %1003 = vrot.lane.b32.xlu1 %v492_v13, %s1569_s11 }
 0x11c   : > { %1475 = vrcp.f32 %v568_v5  ;;  %v773_v21 = vmul.f32 %v760_v18, %v521_v16  ;;  %v496_v22 = vadd.f32 %v495_v20, %v1870_v48  ;;  %v497_v23 = vpop.f32.mrb[21].mxu0  ;;  %1332 = vmatprep.mubr.msk.f32.mxu1 %vm1568_vm1, %v1565_v7  ;;  %v763_v20 = vsel %vm605_vm2, %v1983_v42, %v2001_v9 }
 0x11d   : > { %v1466_v24 = vpop.eup %1465  ;;  %v556_v25 = vmul.f32 1.442695, %v534_v19  ;;  %v498_v26 = vadd.f32 %v497_v23, %v1872_v49  ;;  %1477 = vrcp.f32 %v569_v15 }
 0x11e   : > { %v1468_v38 = vpop.eup %1467  ;;  %v570_v44 = vadd.f32 1.0, %v1466_v24  ;;  %v522_v45 = vmax.f32 %v496_v22, 0.0  ;;  %1333 = vmatmul.mubr.f32.gmra.mrb[14].mxu1 %v773_v21 }
 0x11f   : > { %1479 = vpow2.f32 %v556_v25  ;;  %v535_v54 = vsub.f32 0.0, %v498_v26  ;;  %v501_v55 = vpop.f32.mrb[22].mxu0  ;;  %1005 = vrot.lane.b32.xlu0 %v498_v26, %s1569_s11  ;;  %1041 = vrot.lane.b32.xlu1 %v1468_v38, %s1569_s11 }
 0x120   : > { %1481 = vrcp.f32 %v570_v44  ;;  %v774_v56 = vmul.f32 %v761_v51, %v522_v45  ;;  %v502_v57 = vadd.f32 %v501_v55, %v1870_v48  ;;  %v503_v58 = vpop.f32.mrb[23].mxu0  ;;  %1335 = vmatprep.mubr.msk.f32.mxu1 %vm1568_vm1, %v1565_v7 }
 0x121   : > { %v1470_v59 = vpop.eup %1469  ;;  %v558_v60 = vmul.f32 1.442695, %v535_v54  ;;  %v504_v62 = vadd.f32 %v503_v58, %v1872_v49 }
 0x122   : > { %v1472_v63 = vpop.eup %1471  ;;  %v571_v0 = vadd.f32 1.0, %v1470_v59  ;;  %v523_v1 = vmax.f32 %v502_v57, 0.0  ;;  %1336 = vmatmul.mubr.f32.gmra.mrb[16].mxu1 %v774_v56 }
 0x123   : > { %1483 = vpow2.f32 %v558_v60  ;;  %v536_v5 = vsub.f32 0.0, %v504_v62  ;;  %v507_v6 = vpop.f32.mrb[24].mxu0  ;;  %1043 = vrot.lane.b32.xlu0 %v1472_v63, %s1569_s11  ;;  %1007 = vrot.lane.b32.xlu1 %v504_v62, %s1569_s11 }
 0x124   : > { %1485 = vrcp.f32 %v571_v0  ;;  %v775_v10 = vmul.f32 %v762_v3, %v523_v1  ;;  %v508_v11 = vadd.f32 %v507_v6, %v1870_v48  ;;  %v509_v12 = vpop.f32.mrb[25].mxu0  ;;  %1338 = vmatprep.mubr.msk.f32.mxu1 %vm1568_vm1, %v1565_v7 }
 0x125   : > { %v1474_v13 = vpop.eup %1473  ;;  %v560_v14 = vmul.f32 1.442695, %v536_v5  ;;  %v510_v15 = vadd.f32 %v509_v12, %v1872_v49  ;;  %v2041_v12 = vld [vmem:[%s2226_s5 + $0x1] ss:$0 sm:$0xff] }
 0x126   : > { %v1476_v16 = vpop.eup %1475  ;;  %v572_v18 = vadd.f32 1.0, %v1474_v13  ;;  %v524_v19 = vmax.f32 %v508_v11, 0.0  ;;  %1339 = vmatmul.mubr.f32.gmra.mrb[18].mxu1 %v775_v10  ;;  %v2036_v10 = vld [vmem:[%s2226_s5] ss:$0 sm:$0xff] }
 0x127   : > { %1487 = vpow2.f32 %v560_v14  ;;  %v537_v21 = vsub.f32 0.0, %v510_v15  ;;  %1009 = vrot.lane.b32.xlu0 %v510_v15, %s1569_s11  ;;  %1045 = vrot.lane.b32.xlu1 %v1476_v16, %s1569_s11  ;;  %v1478_v48 = vpop.eup %1477  ;;  %v798_v13 = vmul.f32 %v2036_v10, %v1857_v39  ;;  %v946_v15 = vmul.f32 %v2041_v12, %v1861_v43 }
 0x128   : > { %1489 = vrcp.f32 %v572_v18  ;;  %v776_v22 = vmul.f32 %v763_v20, %v524_v19  ;;  %1341 = vmatprep.mubr.msk.f32.mxu1 %vm1568_vm1, %v1565_v7  ;;  %v799_v20 = vmul.f32 %v2036_v10, %v1875_v50  ;;  %v947_v39 = vmul.f32 %v2041_v12, %v1886_v61 }
 0x129   : > { %v1480_v49 = vpop.eup %1479  ;;  %v562_v23 = vmul.f32 1.442695, %v537_v21 }
 0x12a   : > { %v1482_v24 = vpop.eup %1481  ;;  %v573_v25 = vadd.f32 1.0, %v1480_v49  ;;  %1342 = vmatmul.mubr.f32.gmra.mrb[20].mxu1 %v776_v22 }
 0x12b   : > { %1491 = vpow2.f32 %v562_v23  ;;  %1047 = vrot.lane.b32.xlu0 %v1478_v48, %s1569_s11  ;;  %1049 = vrot.lane.b32.xlu1 %v1482_v24, %s1569_s11 }
 0x12c   : > { %1493 = vrcp.f32 %v573_v25  ;;  %v800_v25 = vmul.f32 %v2036_v10, %v1837_v28 }
 0x12d   : > { %v1484_v46 = vpop.eup %1483 }
 0x12e   : > { %v1486_v26 = vpop.eup %1485  ;;  %v574_v38 = vadd.f32 1.0, %v1484_v46 }
 0x12f   : > { %1051 = vrot.lane.b32.xlu0 %v1486_v26, %s1569_s11 }
 0x130   : > { %1495 = vrcp.f32 %v574_v38  ;;  %v948_v38 = vmul.f32 %v2041_v12, %v1835_v27 }
 0x131   : > { %v1488_v44 = vpop.eup %1487 }
 0x132   : > { %v1490_v45 = vpop.eup %1489  ;;  %v575_v7 = vadd.f32 1.0, %v1488_v44 }
 0x133   : > { %1053 = vrot.lane.b32.xlu1 %v1490_v45, %s1569_s11 }
 0x134   : > { %1497 = vrcp.f32 %v575_v7 }
 0x135   : > { %v1492_v51 = vpop.eup %1491 }
 0x136   : > { %v1494_v54 = vpop.eup %1493  ;;  %v576_v55 = vadd.f32 1.0, %v1492_v51 }
 0x137   : > { %1055 = vrot.lane.b32.xlu0 %v1494_v54, %s1569_s11  ;;  %v801_v54 = vmul.f32 %v2036_v10, %v1859_v41 }
 0x138   : > { %1499 = vrcp.f32 %v576_v55 }
 0x13a   : > { %v1496_v56 = vpop.eup %1495 }
 0x13b   : > { %1057 = vrot.lane.b32.xlu1 %v1496_v56, %s1569_s11 }
 0x13e   : > { %v1498_v57 = vpop.eup %1497 }
 0x13f   : > { %1059 = vrot.lane.b32.xlu0 %v1498_v57, %s1569_s11 }
 0x142   : > { %v1500_v58 = vpop.eup %1499 }
 0x143   : > { %1061 = vrot.lane.b32.xlu1 %v1500_v58, %s1569_s11  ;;  %v949_v58 = vmul.f32 %v2041_v12, %v1851_v35  ;;  %v950_v35 = vmul.f32 %v2041_v12, %v1855_v37  ;;  %v951_v37 = vmul.f32 %v2041_v12, %v1868_v47  ;;  %v952_v47 = vmul.f32 %v2041_v12, %v1877_v52  ;;  %s1505_s11 = sshll.u32 %s1570_s10, 4  ;;  %s1506_s11 = int_to_ptr.vmem [resolvable:$false] %s1505_s11 }
 0x144   : > { %v953_v52 = vmul.f32 %v2041_v12, %v1890_v2  ;;  %v954_v2 = vmul.f32 %v2041_v12, %v1906_v17  ;;  %v955_v17 = vmul.f32 %v2041_v12, %v1919_v53  ;;  %v956_v53 = vmul.f32 %v2041_v12, %v1937_v8  ;;  %s1507_s13 = scalar_lea.vmem %s1506_s11, 3328  ;;  %p1508_p0 = scmp.lt.s32.totalorder %s2173_s26, %s1506_s11 }
 0x145   : > { %v957_v8 = vmul.f32 %v2041_v12, %v1967_v4  ;;  %v958_v4 = vmul.f32 %v2041_v12, %v2001_v9  ;;  %p1509_p1 = scmp.lt.s32.totalorder %s1507_s13, %s1501_s9 }
 0x147   : > { %p1510_p2 = por %p1509_p1, %p1508_p0 }
 0x149   : > { %p1511_p3 = pnand %p1510_p2, %p1504_p13 }
 0x169   : > { %v986_v59 = vpop.permute.xlu0 %985 }
 0x16d   : > { %v988_v60 = vpop.permute.xlu1 %987 }
 0x171   : > { %v990_v62 = vpop.permute.xlu0 %989 }
 0x175   : > { %v992_v63 = vpop.permute.xlu1 %991 }
 0x179   : > { %v2023_v0 = vpop.permute.xlu0 %993 }
 0x17d   : > { %v2025_v1 = vpop.permute.xlu1 %995 }
 0x181   : > { %v2027_v3 = vpop.permute.xlu0 %997 }
 0x185   : > { %v2029_v5 = vpop.permute.xlu1 %999 }
 0x189   : > { %v2031_v6 = vpop.permute.xlu0 %1001  ;;  %v1038_v11 = vpop.permute.xlu1 %1037 }
 0x18d   : > { %v1040_v16 = vpop.permute.xlu0 %1039  ;;  %v2052_v21 = vpop.permute.xlu1 %1003 }
 0x191   : > { %v2060_v46 = vpop.permute.xlu0 %1005  ;;  %v1042_v44 = vpop.permute.xlu1 %1041 }
 0x195   : > { %v1044_v27 = vpop.permute.xlu0 %1043  ;;  %v2080_v41 = vpop.permute.xlu1 %1007 }
 0x1cd   : > { %v877_v14 = vpop.f32.mrb[26].mxu0 }
 0x1ce   : > { %v878_v18 = vadd.f32 %v877_v14, %v798_v13  ;;  %v1307_v19 = vpop.f32.mrb[27].mxu0  ;;  %v802_v14 = vmul.f32 %v2036_v10, %v1839_v29  ;;  %v803_v29 = vmul.f32 %v2036_v10, %v1841_v30  ;;  %v804_v30 = vmul.f32 %v2036_v10, %v1843_v31 }
 0x1cf   : > { %v805_v31 = vmul.f32 %v2036_v10, %v1845_v32  ;;  %v806_v32 = vmul.f32 %v2036_v10, %v1847_v33  ;;  %v807_v33 = vmul.f32 %v2036_v10, %v1849_v34  ;;  %v808_v34 = vmul.f32 %v2036_v10, %v1853_v36 }
 0x1d0   : > { %v959_v48 = vadd.f32 %v946_v15, %v878_v18  ;;  %v809_v36 = vmul.f32 %v2036_v10, %v1950_v40  ;;  %v810_v40 = vmul.f32 %v2036_v10, %v1983_v42 }
 0x1d1   : > { %v882_v22 = vpop.f32.mrb[28].mxu0 }
 0x1d2   : > { %v1077_v43 = vsel %vm1076_vm3, %v959_v48, %v986_v59  ;;  %v883_v49 = vadd.f32 %v882_v22, %v799_v20  ;;  %v1310_v23 = vpop.f32.mrb[29].mxu0  ;;  %v2090_v22 = vpop.permute.xlu0 %1009 }
 0x1d3   : > { %v1091_v24 = vsel %vm1090_vm4, %v1077_v43, %v1038_v11  ;;  %v1046_v23 = vpop.permute.xlu1 %1045 }
 0x1d4   : > { %v1105_v50 = vsel %vm1104_vm5, %v1091_v24, 0.0  ;;  %v960_v26 = vadd.f32 %v947_v39, %v883_v49 }
 0x1d5   : > { %1118 = vst [vmem:[%s2063_s18] sm:$0xff] %v1105_v50  ;;  %v887_v61 = vpop.f32.mrb[0].mxu1 }
 0x1d6   : > { %v1078_v45 = vsel %vm1076_vm3, %v960_v26, %v988_v60  ;;  %v888_v7 = vadd.f32 %v887_v61, %v800_v25  ;;  %v1313_v51 = vpop.f32.mrb[1].mxu1 }
 0x1d7   : > { %v1092_v28 = vsel %vm1090_vm4, %v1078_v45, %v1040_v16 }
 0x1d8   : > { %v1106_v55 = vsel %vm1104_vm5, %v1092_v28, 0.0  ;;  %v961_v56 = vadd.f32 %v948_v38, %v888_v7 }
 0x1d9   : > { %1119 = vst [vmem:[%s2063_s18 + $0x8] sm:$0xff] %v1106_v55  ;;  %v892_v57 = vpop.f32.mrb[2].mxu1 }
 0x1da   : > { %v1079_v59 = vsel %vm1076_vm3, %v961_v56, %v990_v62  ;;  %v893_v60 = vadd.f32 %v892_v57, %v801_v54  ;;  %v1316_v11 = vpop.f32.mrb[3].mxu1  ;;  %v1050_v56 = vpop.permute.xlu1 %1049 }
 0x1db   : > { %v1093_v13 = vsel %vm1090_vm4, %v1079_v59, %v1042_v44  ;;  %v1048_v44 = vpop.permute.xlu0 %1047 }
 0x1dc   : > { %v1107_v15 = vsel %vm1104_vm5, %v1093_v13, 0.0  ;;  %v962_v16 = vadd.f32 %v949_v58, %v893_v60 }
 0x1dd   : > { %1120 = vst [vmem:[%s2063_s18 + $0x10] sm:$0xff] %v1107_v15  ;;  %v897_v18 = vpop.f32.mrb[4].mxu1 }
 0x1de   : > { %v1080_v62 = vsel %vm1076_vm3, %v962_v16, %v992_v63  ;;  %v898_v19 = vadd.f32 %v897_v18, %v802_v14  ;;  %v1319_v20 = vpop.f32.mrb[5].mxu1 }
 0x1df   : > { %v1094_v48 = vsel %vm1090_vm4, %v1080_v62, %v1044_v27  ;;  %v1052_v13 = vpop.permute.xlu0 %1051 }
 0x1e0   : > { %v1108_v39 = vsel %vm1104_vm5, %v1094_v48, 0.0  ;;  %v963_v43 = vadd.f32 %v950_v35, %v898_v19  ;;  %v1054_v19 = vpop.permute.xlu1 %1053 }
 0x1e1   : > { %1121 = vst [vmem:[%s2063_s18 + $0x18] sm:$0xff] %v1108_v39  ;;  %v902_v49 = vpop.f32.mrb[6].mxu1 }
 0x1e2   : > { %v1081_v63 = vsel %vm1076_vm3, %v963_v43, %v2023_v0  ;;  %v903_v24 = vadd.f32 %v902_v49, %v803_v29  ;;  %v1322_v25 = vpop.f32.mrb[7].mxu1 }
 0x1e3   : > { %v1095_v50 = vsel %vm1090_vm4, %v1081_v63, %v1046_v23 }
 0x1e4   : > { %v1109_v26 = vsel %vm1104_vm5, %v1095_v50, 0.0  ;;  %v964_v61 = vadd.f32 %v951_v37, %v903_v24  ;;  %v1056_v37 = vpop.permute.xlu0 %1055 }
 0x1e5   : > { %1122 = vst [vmem:[%s2063_s18 + $0x20] sm:$0xff] %v1109_v26  ;;  %v907_v38 = vpop.f32.mrb[8].mxu1  ;;  %v1058_v26 = vpop.permute.xlu1 %1057 }
 0x1e6   : > { %v1082_v0 = vsel %vm1076_vm3, %v964_v61, %v2025_v1  ;;  %v908_v45 = vadd.f32 %v907_v38, %v804_v30  ;;  %v1325_v7 = vpop.f32.mrb[9].mxu1 }
 0x1e7   : > { %v1096_v51 = vsel %vm1090_vm4, %v1082_v0, %v1048_v44 }
 0x1e8   : > { %v1110_v28 = vsel %vm1104_vm5, %v1096_v51, 0.0  ;;  %v965_v54 = vadd.f32 %v952_v47, %v908_v45  ;;  %v1060_v7 = vpop.permute.xlu0 %1059 }
 0x1e9   : > { %1123 = vst [vmem:[%s2063_s18 + $0x28] sm:$0xff] %v1110_v28  ;;  %v912_v55 = vpop.f32.mrb[10].mxu1 }
 0x1ea   : > { %v1083_v1 = vsel %vm1076_vm3, %v965_v54, %v2027_v3  ;;  %v913_v57 = vadd.f32 %v912_v55, %v805_v31  ;;  %v1328_v58 = vpop.f32.mrb[11].mxu1  ;;  %v1062_v54 = vpop.permute.xlu1 %1061 }
 0x1eb   : > { %v1097_v27 = vsel %vm1090_vm4, %v1083_v1, %v1050_v56 }
 0x1ec   : > { %v1111_v59 = vsel %vm1104_vm5, %v1097_v27, 0.0  ;;  %v966_v60 = vadd.f32 %v953_v52, %v913_v57 }
 0x1ed   : > { %1124 = vst [vmem:[%s2063_s18 + $0x30] sm:$0xff] %v1111_v59  ;;  %v917_v11 = vpop.f32.mrb[12].mxu1 }
 0x1ee   : > { %v1084_v3 = vsel %vm1076_vm3, %v966_v60, %v2029_v5  ;;  %v918_v14 = vadd.f32 %v917_v11, %v806_v32  ;;  %v1331_v15 = vpop.f32.mrb[13].mxu1 }
 0x1ef   : > { %v1098_v16 = vsel %vm1090_vm4, %v1084_v3, %v1052_v13 }
 0x1f0   : > { %v1112_v18 = vsel %vm1104_vm5, %v1098_v16, 0.0  ;;  %v967_v35 = vadd.f32 %v954_v2, %v918_v14 }
 0x1f1   : > { %1125 = vst [vmem:[%s2063_s18 + $0x38] sm:$0xff] %v1112_v18  ;;  %v922_v62 = vpop.f32.mrb[14].mxu1 }
 0x1f2   : > { %v1085_v5 = vsel %vm1076_vm3, %v967_v35, %v2031_v6  ;;  %v923_v20 = vadd.f32 %v922_v62, %v807_v33  ;;  %v1334_v48 = vpop.f32.mrb[15].mxu1 }
 0x1f3   : > { %v1099_v29 = vsel %vm1090_vm4, %v1085_v5, %v1054_v19 }
 0x1f4   : > { %v1113_v39 = vsel %vm1104_vm5, %v1099_v29, 0.0  ;;  %v968_v43 = vadd.f32 %v955_v17, %v923_v20 }
 0x1f5   : > { %1126 = vst [vmem:[%s2063_s18 + $0x40] sm:$0xff] %v1113_v39  ;;  %v927_v49 = vpop.f32.mrb[16].mxu1 }
 0x1f6   : > { %v1086_v6 = vsel %vm1076_vm3, %v968_v43, %v2052_v21  ;;  %v928_v23 = vadd.f32 %v927_v49, %v808_v34  ;;  %v1337_v63 = vpop.f32.mrb[17].mxu1 }
 0x1f7   : > { %v1100_v24 = vsel %vm1090_vm4, %v1086_v6, %v1056_v37 }
 0x1f8   : > { %v1114_v25 = vsel %vm1104_vm5, %v1100_v24, 0.0  ;;  %v969_v50 = vadd.f32 %v956_v53, %v928_v23 }
 0x1f9   : > { %1127 = vst [vmem:[%s2063_s18 + $0x48] sm:$0xff] %v1114_v25  ;;  %v932_v30 = vpop.f32.mrb[18].mxu1 }
 0x1fa   : > { %v1087_v21 = vsel %vm1076_vm3, %v969_v50, %v2060_v46  ;;  %v933_v61 = vadd.f32 %v932_v30, %v809_v36  ;;  %v1340_v38 = vpop.f32.mrb[19].mxu1 }
 0x1fb   : > { %v1101_v47 = vsel %vm1090_vm4, %v1087_v21, %v1058_v26 }
 0x1fc   : > { %v1115_v44 = vsel %vm1104_vm5, %v1101_v47, 0.0  ;;  %v970_v0 = vadd.f32 %v957_v8, %v933_v61 }
 0x1fd   : > { %1128 = vst [vmem:[%s2063_s18 + $0x50] sm:$0xff] %v1115_v44  ;;  %v937_v45 = vpop.f32.mrb[20].mxu1 }
 0x1fe   : > { %v1088_v46 = vsel %vm1076_vm3, %v970_v0, %v2080_v41  ;;  %v938_v51 = vadd.f32 %v937_v45, %v810_v40  ;;  %v1343_v31 = vpop.f32.mrb[21].mxu1 }
 0x1ff   : > { %v1102_v42 = vsel %vm1090_vm4, %v1088_v46, %v1060_v7 }
 0x200   : > { %v1116_v10 = vsel %vm1104_vm5, %v1102_v42, 0.0  ;;  %v971_v28 = vadd.f32 %v958_v4, %v938_v51 }
 0x201   : > { %1129 = vst [vmem:[%s2063_s18 + $0x58] sm:$0xff] %v1116_v10 }
 0x202   : > { %v1089_v9 = vsel %vm1076_vm3, %v971_v28, %v2090_v22 }
 0x203   : > { %v1103_v12 = vsel %vm1090_vm4, %v1089_v9, %v1062_v54 }
 0x204   : > { %v1117_v41 = vsel %vm1104_vm5, %v1103_v12, 0.0 }
 0x205   : > { %1130 = vst [vmem:[%s2063_s18 + $0x60] sm:$0xff] %v1117_v41 }
 0x206   : > { %1514 = shalt.err (!%p1511_p3)
}
 0x207   : > { %s1515_s14 = scalar_lea.hbm %s2171_s29, 1664  ;;  %s1519_s17 = scalar_lea.hbm %s2227_s6, 3328 }
 0x208   : > { %p1516_p4 = scmp.ne.s32.totalorder %s2171_s29, %s1515_s14  ;;  %p1520_p9 = scmp.lt.u32.totalorder %s2171_s29, %s2227_s6 }
 0x209   : > { %p1521_p10 = scmp.lt.u32.totalorder %s1519_s17, %s1515_s14  ;;  %p1523_p12 = scmp.lt.u32.totalorder %s1515_s14, %s2171_s29 }
 0x20a   : > { %p1517_p7 = pnand %p1516_p4, %p1646_p5 }
 0x20b   : > { %p1522_p11 = por %p1521_p10, %p1520_p9 }
 0x20c   : > { %p1518_p8 = pneg %p1517_p7 }
 0x20d   : > { %p1524_p13 = por %p1523_p12, %p1522_p11 }
 0x20f   : > { %p1525_p0 = pnand %p1524_p13, %p1518_p8 }
 0x211   : > { %1528 = shalt.err (!%p1525_p0)
}
 0x212   : > { %s1571_s20 = smov 128   ;;  %s1572_s28 = smov 8  }
 0x213   : > { %1401 = dma.vmem_to_hbm [thread:$0]  (%p1646_p5), %s2173_s26, 1664, %s2171_s29, %s2180_s25, %s1571_s20, %s1571_s20, %s1572_s28  }
 0x214 PF: > { %p1407_p1 = scmp.ge.s32.totalorder %s1563_s24, 2  ;;  %s1160_s19 = sand.u32 1, %s1551_s21  }
 0x215   : > { %s1161_s9 = scalar_lea.sflag [#allocation3], %s1160_s19 }
 0x216   : > { %p1404_p2 = pnand %p1407_p1, %p1650_p6 }
 0x218   : > { %1546 = dma.done.wait (!%p1404_p2), %s1161_s9, 1664  }
 0x219   : > { %1548 = vsyncadd (!%p1404_p2), %s1161_s9, 4294965632  ;;  %p16_p3 = scmp.ge.s32.totalorder %s1633_s27, 4   ;;  %s2230_s21 = smov %s1555_s22 }
 0x21a   : > { %s2231_s22 = smov %s1559_s23  ;;  %s2232_s23 = smov %s1644_s30 }
 0x21b   : > { %s2233_s24 = smov %s1633_s27  ;;  %18 = sbr.rel (!%p16_p3) target bundleno = 3 (0x3), region = 82 }
 0x222   :  { %1166 = vsyncpa [#allocation3], 1 }
 0x223   :  { %1168 = vsyncpa [#allocation3 + $0x1], 1 }

</bundles_post_ra>
